<compile_context>
chip_gen: v7x
topology: tpu7x:2x2x1
jax: 0.10.0
libtpu: 0.0.40
codegen_flags: <defaults>
</compile_context>

<pallas_src>
import numpy as np
import jax
import jax.numpy as jnp
from jax.experimental import pallas as pl
from jax.experimental.pallas import tpu as pltpu

# ----------------------------------------------------------------------------
# Deterministic "random" effect parameters (random.uniform/randint in torch).
# ----------------------------------------------------------------------------
B, C, H, W = 8, 3, 64, 128       # W = 128 -> lane-dense layout on TPU

STEAM_OPACITY  = 0.2             # random.uniform(0.1, 0.3)
STEAM_SIGMA    = 8.0             # random.uniform(5, 15)
WARMTH         = 0.1             # random.uniform(0.05, 0.15)
SHADOW_OPACITY = 0.25            # random.uniform(0.1, 0.4)
SHADOW_X       = W // 3          # random.randint(0, w - 1)
SHADOW_Y       = H // 3          # random.randint(0, h - 1)
SHADOW_RADIUS  = W // 3          # random.randint(w // 4, w // 2)


def gaussian_blur_matrix(n: int, sigma: float) -> np.ndarray:
    """Dense K such that K @ v == scipy.ndimage.gaussian_filter1d(v, sigma,
    mode='reflect', truncate=4.0)."""
    radius = int(4.0 * sigma + 0.5)
    x = np.arange(-radius, radius + 1, dtype=np.float64)
    w = np.exp(-0.5 * (x / sigma) ** 2)
    w /= w.sum()
    K = np.zeros((n, n), dtype=np.float64)
    for i in range(n):
        for off, wt in zip(range(-radius, radius + 1), w):
            j = i + off
            # 'reflect' boundary: (d c b a | a b c d | d c b a)
            while j < 0 or j >= n:
                if j < 0:
                    j = -j - 1
                if j >= n:
                    j = 2 * n - j - 1
            K[i, j] += wt
    return K.astype(np.float32)


def shadow_complement(h: int, w: int) -> np.ndarray:
    """Host-precomputed (1 - shadow_mask), static given fixed parameters."""
    yy, xx = np.meshgrid(np.arange(h, dtype=np.float64),
                         np.arange(w, dtype=np.float64), indexing='ij')
    dist = np.sqrt((xx - SHADOW_X) ** 2 + (yy - SHADOW_Y) ** 2)
    return (1.0 - np.exp(-dist / SHADOW_RADIUS) * SHADOW_OPACITY).astype(np.float32)


# ----------------------------------------------------------------------------
# Pallas kernel: blur (2 MXU matmuls) + steam blend + warmth + shadow, fused.
#   kh_ref already contains  STEAM_OPACITY * Kh @ diag(linspace(1.0, 0.2, H)).
#   shadowc_ref already contains (1 - shadow_mask).
# ----------------------------------------------------------------------------
def oven_kernel(img_ref, noise_ref, kh_ref, kwt_ref, shadowc_ref, out_ref):
    # steam mask (opacity + vertical ramp folded into kh): Kh' @ noise @ Kwt
    tmp = jnp.dot(kh_ref[...], noise_ref[...], preferred_element_type=jnp.float32)
    steam = jnp.dot(tmp, kwt_ref[...], preferred_element_type=jnp.float32)   # (H, W)

    one_minus_steam = 1.0 - steam          # computed once, reused by all channels
    steam_add = 0.9 * steam                # steam_color (=0.9) * mask
    shadow_c = shadowc_ref[...]            # (1 - shadow_mask), constant input

    # steam blend -> warmth (clamp R/B only, as in torch) -> shadow multiply
    r = jnp.clip((img_ref[0] * one_minus_steam + steam_add) * (1.0 + WARMTH), 0.0, 1.0)
    g = img_ref[1] * one_minus_steam + steam_add
    b = jnp.clip((img_ref[2] * one_minus_steam + steam_add) * (1.0 - WARMTH / 2.0), 0.0, 1.0)

    out_ref[...] = jnp.stack([r * shadow_c, g * shadow_c, b * shadow_c], axis=0)


def simple_oven_effect(imgs: jax.Array, noise: jax.Array, kh_fold: jax.Array,
                       kwt: jax.Array, shadow_c: jax.Array) -> jax.Array:
    b, c, h, w = imgs.shape
    return pl.pallas_call(
        oven_kernel,
        out_shape=jax.ShapeDtypeStruct((b, c, h, w), jnp.float32),
        grid=(b,),
        in_specs=[
            pl.BlockSpec((None, c, h, w), lambda i: (i, 0, 0, 0)),   # one image / step
            pl.BlockSpec((None, h, w),   lambda i: (i, 0, 0)),       # its noise field
            pl.BlockSpec((h, h),         lambda i: (0, 0)),          # folded row blur
            pl.BlockSpec((w, w),         lambda i: (0, 0)),          # column blur (T)
            pl.BlockSpec((h, w),         lambda i: (0, 0)),          # 1 - shadow mask
        ],
        out_specs=pl.BlockSpec((None, c, h, w), lambda i: (i, 0, 0, 0)),
        compiler_params=pltpu.CompilerParams(
            dimension_semantics=("parallel",)),
    )(imgs, noise, kh_fold, kwt, shadow_c)


# ----------------------------------------------------------------------------
# Pure-JAX reference (unfolded math, straight from the torch module).
# ----------------------------------------------------------------------------
def reference(imgs, noise, kh_raw, kwt):
    _, _, h, w = imgs.shape
    y_coords = jnp.linspace(1.0, 0.2, h).reshape(1, h, 1)
    steam_base = noise * y_coords                                    # (B, H, W)
    steam = jnp.einsum('ij,bjk,kl->bil', kh_raw, steam_base, kwt) * STEAM_OPACITY

    res = imgs * (1.0 - steam[:, None]) + 0.9 * steam[:, None]
    r = jnp.clip(res[:, 0] * (1.0 + WARMTH), 0.0, 1.0)
    g = res[:, 1]
    b = jnp.clip(res[:, 2] * (1.0 - WARMTH / 2.0), 0.0, 1.0)
    res = jnp.stack([r, g, b], axis=1)

    yy, xx = jnp.meshgrid(jnp.arange(h, dtype=jnp.float32),
                          jnp.arange(w, dtype=jnp.float32), indexing='ij')
    dist = jnp.sqrt((xx - SHADOW_X) ** 2 + (yy - SHADOW_Y) ** 2)
    shadow = jnp.exp(-dist / SHADOW_RADIUS) * SHADOW_OPACITY
    return res * (1.0 - shadow)[None, None]


if __name__ == "__main__":
    key = jax.random.PRNGKey(0)
    k_img, k_noise = jax.random.split(key)

    imgs = jax.random.uniform(k_img, (B, C, H, W), dtype=jnp.float32)    # images in [0,1]
    noise = jax.random.uniform(k_noise, (B, H, W), dtype=jnp.float32)    # torch.rand(1,h,w) analogue

    kh_raw = gaussian_blur_matrix(H, STEAM_SIGMA)                        # row blur
    kw_raw = gaussian_blur_matrix(W, STEAM_SIGMA)                        # col blur
    ramp = np.linspace(1.0, 0.2, H).astype(np.float32)
    # Fold vertical ramp (applied per source row) and opacity into the row blur.
    kh_fold = (STEAM_OPACITY * kh_raw * ramp[None, :]).astype(np.float32)

    kh_fold_j = jnp.asarray(kh_fold)
    kwt_j = jnp.asarray(kw_raw.T)
    shadow_c_j = jnp.asarray(shadow_complement(H, W))

    out = simple_oven_effect(imgs, noise, kh_fold_j, kwt_j, shadow_c_j)
    out = jax.block_until_ready(out)

    ref = reference(imgs, noise, jnp.asarray(kh_raw), kwt_j)
    assert np.allclose(np.asarray(out), np.asarray(ref), atol=1e-4, rtol=1e-4), \
        "Pallas kernel does not match reference"
    print("KERNEL_OK")
</pallas_src>

<mosaic_0001>
module attributes {stable_mosaic.version = 11 : i64} {
  func.func @oven_kernel(%arg0: i32, %arg1: memref<1x3x64x128xf32, #tpu.memory_space<vmem>>, %arg2: memref<1x64x128xf32, #tpu.memory_space<vmem>>, %arg3: memref<64x64xf32, #tpu.memory_space<vmem>>, %arg4: memref<128x128xf32, #tpu.memory_space<vmem>>, %arg5: memref<64x128xf32, #tpu.memory_space<vmem>>, %arg6: memref<1x3x64x128xf32, #tpu.memory_space<vmem>>) attributes {dimension_semantics = [#tpu.dimension_semantics<parallel>], iteration_bounds = array<i64: 8>, scalar_prefetch = 0 : i64, scratch_operands = 0 : i64, tpu.core_type = #tpu.core_type<tc>, window_params = [{transform_indices = @transform_0, window_bounds = array<i64: 1, 3, 64, 128>}, {transform_indices = @transform_1, window_bounds = array<i64: 1, 64, 128>}, {pipeline_mode = #tpu.pipeline_mode<synchronous>, transform_indices = @transform_2, window_bounds = array<i64: 64, 64>}, {pipeline_mode = #tpu.pipeline_mode<synchronous>, transform_indices = @transform_3, window_bounds = array<i64: 128, 128>}, {pipeline_mode = #tpu.pipeline_mode<synchronous>, transform_indices = @transform_4, window_bounds = array<i64: 64, 128>}, {transform_indices = @transform_5, window_bounds = array<i64: 1, 3, 64, 128>}]} {
    %c0 = arith.constant 0 : index
    %c0_0 = arith.constant 0 : index
    %0 = vector.load %arg3[%c0, %c0_0] : memref<64x64xf32, #tpu.memory_space<vmem>>, vector<64x64xf32>
    %c0_1 = arith.constant 0 : index
    %c0_2 = arith.constant 0 : index
    %c0_3 = arith.constant 0 : index
    %1 = vector.load %arg2[%c0_1, %c0_2, %c0_3] : memref<1x64x128xf32, #tpu.memory_space<vmem>>, vector<1x64x128xf32>
    %2 = vector.shape_cast %1 : vector<1x64x128xf32> to vector<64x128xf32>
    %cst = arith.constant dense<0.000000e+00> : vector<64x128xf32>
    %3 = tpu.matmul %0, %2, %cst {dimension_numbers = #tpu.dot_dimension_numbers<[1], [0], [0], [1], [0, 0, 1, 1], [], []>} : vector<64x64xf32>, vector<64x128xf32>, vector<64x128xf32> -> vector<64x128xf32>
    %c0_4 = arith.constant 0 : index
    %c0_5 = arith.constant 0 : index
    %4 = vector.load %arg4[%c0_4, %c0_5] : memref<128x128xf32, #tpu.memory_space<vmem>>, vector<128x128xf32>
    %cst_6 = arith.constant dense<0.000000e+00> : vector<64x128xf32>
    %5 = tpu.matmul %3, %4, %cst_6 {dimension_numbers = #tpu.dot_dimension_numbers<[1], [0], [0], [1], [0, 0, 1, 1], [], []>} : vector<64x128xf32>, vector<128x128xf32>, vector<64x128xf32> -> vector<64x128xf32>
    %cst_7 = arith.constant 1.000000e+00 : f32
    %6 = vector.broadcast %cst_7 : f32 to vector<64x128xf32>
    %7 = arith.subf %6, %5 : vector<64x128xf32>
    %cst_8 = arith.constant 0.899999976 : f32
    %8 = vector.broadcast %cst_8 : f32 to vector<64x128xf32>
    %9 = arith.mulf %8, %5 : vector<64x128xf32>
    %c0_9 = arith.constant 0 : index
    %c0_10 = arith.constant 0 : index
    %10 = vector.load %arg5[%c0_9, %c0_10] : memref<64x128xf32, #tpu.memory_space<vmem>>, vector<64x128xf32>
    %c0_11 = arith.constant 0 : index
    %c0_12 = arith.constant 0 : index
    %c0_13 = arith.constant 0 : index
    %c0_14 = arith.constant 0 : index
    %11 = vector.load %arg1[%c0_11, %c0_12, %c0_13, %c0_14] : memref<1x3x64x128xf32, #tpu.memory_space<vmem>>, vector<1x1x64x128xf32>
    %12 = vector.shape_cast %11 : vector<1x1x64x128xf32> to vector<64x128xf32>
    %13 = arith.mulf %12, %7 : vector<64x128xf32>
    %14 = arith.addf %13, %9 : vector<64x128xf32>
    %cst_15 = arith.constant 1.100000e+00 : f32
    %15 = vector.broadcast %cst_15 : f32 to vector<64x128xf32>
    %16 = arith.mulf %14, %15 : vector<64x128xf32>
    %cst_16 = arith.constant 0.000000e+00 : f32
    %cst_17 = arith.constant 1.000000e+00 : f32
    %17 = vector.broadcast %cst_16 : f32 to vector<64x128xf32>
    %18 = arith.maximumf %17, %16 : vector<64x128xf32>
    %19 = vector.broadcast %cst_17 : f32 to vector<64x128xf32>
    %20 = arith.minimumf %19, %18 : vector<64x128xf32>
    %c0_18 = arith.constant 0 : index
    %c1 = arith.constant 1 : index
    %c0_19 = arith.constant 0 : index
    %c0_20 = arith.constant 0 : index
    %21 = vector.load %arg1[%c0_18, %c1, %c0_19, %c0_20] : memref<1x3x64x128xf32, #tpu.memory_space<vmem>>, vector<1x1x64x128xf32>
    %22 = vector.shape_cast %21 : vector<1x1x64x128xf32> to vector<64x128xf32>
    %23 = arith.mulf %22, %7 : vector<64x128xf32>
    %24 = arith.addf %23, %9 : vector<64x128xf32>
    %c0_21 = arith.constant 0 : index
    %c2 = arith.constant 2 : index
    %c0_22 = arith.constant 0 : index
    %c0_23 = arith.constant 0 : index
    %25 = vector.load %arg1[%c0_21, %c2, %c0_22, %c0_23] : memref<1x3x64x128xf32, #tpu.memory_space<vmem>>, vector<1x1x64x128xf32>
    %26 = vector.shape_cast %25 : vector<1x1x64x128xf32> to vector<64x128xf32>
    %27 = arith.mulf %26, %7 : vector<64x128xf32>
    %28 = arith.addf %27, %9 : vector<64x128xf32>
    %cst_24 = arith.constant 0.949999988 : f32
    %29 = vector.broadcast %cst_24 : f32 to vector<64x128xf32>
    %30 = arith.mulf %28, %29 : vector<64x128xf32>
    %cst_25 = arith.constant 0.000000e+00 : f32
    %cst_26 = arith.constant 1.000000e+00 : f32
    %31 = vector.broadcast %cst_25 : f32 to vector<64x128xf32>
    %32 = arith.maximumf %31, %30 : vector<64x128xf32>
    %33 = vector.broadcast %cst_26 : f32 to vector<64x128xf32>
    %34 = arith.minimumf %33, %32 : vector<64x128xf32>
    %35 = arith.mulf %20, %10 : vector<64x128xf32>
    %36 = arith.mulf %24, %10 : vector<64x128xf32>
    %37 = arith.mulf %34, %10 : vector<64x128xf32>
    %38 = vector.shape_cast %35 : vector<64x128xf32> to vector<1x64x128xf32>
    %39 = vector.shape_cast %36 : vector<64x128xf32> to vector<1x64x128xf32>
    %40 = vector.shape_cast %37 : vector<64x128xf32> to vector<1x64x128xf32>
    %41 = tpu.concatenate %38, %39, %40 in 0 : vector<1x64x128xf32>, vector<1x64x128xf32>, vector<1x64x128xf32> -> vector<3x64x128xf32>
    %c0_27 = arith.constant 0 : index
    %c0_28 = arith.constant 0 : index
    %c0_29 = arith.constant 0 : index
    %c0_30 = arith.constant 0 : index
    %42 = vector.load %arg6[%c0_27, %c0_28, %c0_29, %c0_30] : memref<1x3x64x128xf32, #tpu.memory_space<vmem>>, vector<1x3x64x128xf32>
    %43 = vector.shape_cast %42 : vector<1x3x64x128xf32> to vector<3x64x128xf32>
    %44 = vector.shape_cast %41 : vector<3x64x128xf32> to vector<1x3x64x128xf32>
    tpu.vector_store %arg6[%c0_27, %c0_28, %c0_29, %c0_30], %44 {strides = array<i32>} : memref<1x3x64x128xf32, #tpu.memory_space<vmem>>, vector<1x3x64x128xf32>,
    return
  }
  func.func @transform_0(%arg0: i32) -> (i32, i32, i32, i32) {
    %c0_i32 = arith.constant 0 : i32
    %c0_i32_0 = arith.constant 0 : i32
    %c0_i32_1 = arith.constant 0 : i32
    %c0_i32_2 = arith.constant 0 : i32
    return %arg0, %c0_i32, %c0_i32_0, %c0_i32_1 : i32, i32, i32, i32
  }
  func.func @transform_1(%arg0: i32) -> (i32, i32, i32) {
    %c0_i32 = arith.constant 0 : i32
    %c0_i32_0 = arith.constant 0 : i32
    %c0_i32_1 = arith.constant 0 : i32
    return %arg0, %c0_i32, %c0_i32_0 : i32, i32, i32
  }
  func.func @transform_2(%arg0: i32) -> (i32, i32) {
    %c0_i32 = arith.constant 0 : i32
    %c0_i32_0 = arith.constant 0 : i32
    %c0_i32_1 = arith.constant 0 : i32
    return %c0_i32, %c0_i32_0 : i32, i32
  }
  func.func @transform_3(%arg0: i32) -> (i32, i32) {
    %c0_i32 = arith.constant 0 : i32
    %c0_i32_0 = arith.constant 0 : i32
    %c0_i32_1 = arith.constant 0 : i32
    return %c0_i32, %c0_i32_0 : i32, i32
  }
  func.func @transform_4(%arg0: i32) -> (i32, i32) {
    %c0_i32 = arith.constant 0 : i32
    %c0_i32_0 = arith.constant 0 : i32
    %c0_i32_1 = arith.constant 0 : i32
    return %c0_i32, %c0_i32_0 : i32, i32
  }
  func.func @transform_5(%arg0: i32) -> (i32, i32, i32, i32) {
    %c0_i32 = arith.constant 0 : i32
    %c0_i32_0 = arith.constant 0 : i32
    %c0_i32_1 = arith.constant 0 : i32
    %c0_i32_2 = arith.constant 0 : i32
    return %arg0, %c0_i32, %c0_i32_0, %c0_i32_1 : i32, i32, i32, i32
  }
}

</mosaic_0001>

<bundles_post_ra>
// kernel: tpu_custom_call.1
= control target key start
LH: loop header
LB: loop body
LE: loop exit
PB: predicated region body
PF: predicated region fallthrough
CT: control target
= control target key end

     0   :  { %s1874_s0 = inlined_call_operand.hbm [shape: f32[8,3,64,128], index: 0, kind: input, shape index: {}]   ;;  %s1875_s1 = inlined_call_operand.hbm [shape: f32[8,64,128], index: 1, kind: input, shape index: {}]   ;;  %s1876_s2 = inlined_call_operand.hbm [shape: f32[64,64], index: 2, kind: input, shape index: {}]   ;;  %s1877_s3 = inlined_call_operand.hbm [shape: f32[128,128], index: 3, kind: input, shape index: {}]   ;;  %s1878_s4 = inlined_call_operand.hbm [shape: f32[64,128], index: 4, kind: input, shape index: {}]   ;;  %s1879_s5 = inlined_call_operand.hbm [shape: f32[8,3,64,128], index: 5, kind: output, shape index: {}]  }
   0x1   :  { %1887 = sst [smem:[#allocation17_spill]] %s1874_s0 }
   0x2   :  { %1888 = sst [smem:[#allocation18_spill]] %s1876_s2 }
   0x3   :  { %1889 = sst [smem:[#allocation19_spill]] %s1877_s3 }
   0x4   :  { %10 = vsyncpa [#allocation3], 0 }
   0x5   :  { %12 = vsyncpa [#allocation3 + $0x1], 0 }
   0x6   :  { %13 = vsyncpa [#allocation6], 0 }
   0x7   :  { %15 = vsyncpa [#allocation6 + $0x1], 0 }
   0x8   :  { %16 = vsyncpa [#allocation9], 0 }
   0x9   :  { %17 = vsyncpa [#allocation4], 0 }
   0xa   :  { %19 = vsyncpa [#allocation4 + $0x1], 0  ;;  %s1482_s18 = smov 0   ;;  %s1484_s19 = smov 0  }
   0xb   :  { %s1486_s20 = smov 0   ;;  %s1488_s21 = smov 0  }
   0xc LB: > { %s1503_s22 = sadd.s32 4294967295, %s1440_s21   ;;  %s925_s23 = sadd.s32 4294967294, %s1440_s21   ;;  %s1440_s21 = sphi %s1488_s21, %s1914_s21   ;;  %s1436_s20 = sphi %s1486_s20, %s1913_s20   ;;  %s1432_s19 = sphi %s1484_s19, %s1912_s19   ;;  %s1428_s18 = sphi %s1482_s18, %s1911_s18  }
   0xd   : > { %p45_p0 = scmp.ne.s32.totalorder %s1432_s19, %s1428_s18  ;;  %p1880_p1 = scmp.eq.s32.totalorder %s1503_s22, 0 }
   0xe   : > { %p164_p3 = scmp.eq.s32.totalorder %s925_s23, 7  ;;  %p926_p5 = scmp.ge.s32.totalorder %s1440_s21, 1 }
   0xf   : > { %p1512_p4 = por %p1880_p1, %p45_p0  ;;  %p171_p7 = scmp.lt.s32.totalorder %s1440_s21, 9 }
  0x10   : > { %p1517_p6 = por %p164_p3, %p45_p0  ;;  %s1442_s27 = smov [#allocation7]  }
  0x11   : > { %s1890_s24 = scalar_select %p1512_p4, 1, 0 }
  0x12   : > { %s1891_s25 = scalar_select %p1517_p6, 1, 0 }
  0x13   : > { %p1522_p8 = pnand %p926_p5, %p171_p7  ;;  %s183_s28 = sshll.u32 %s1442_s27, 4  ;;  %s1526_s28 = int_to_ptr.vmem [resolvable:$true] %s183_s28 }
  0x14   : > { %s1443_s30 = smov [#allocation8]   ;;  %s1444_s7 = smov [#allocation10]  }
  0x15   : > { %s1892_s26 = scalar_select %p1522_p8, 1, 0 }
  0x16   : > { %p1150_p9 = pneg %p1522_p8  ;;  %s196_s6 = sshll.u32 %s1443_s30, 4  ;;  %s1536_s6 = int_to_ptr.vmem [resolvable:$true] %s196_s6 }
  0x17   : > { %s1538_s8 = sshll.u32 %s1444_s7, 4  ;;  %s1894_s2 = sld [smem:[#allocation18_spill]]  ;;  %s210_s8 = int_to_ptr.vmem [resolvable:$true] %s1538_s8 }
  0x18   : > { %p1532_p10 = pnand %p1150_p9, %p1880_p1 }
  0x1a   : > { %p1548_p12 = pneg %p1532_p10 }
  0x1d   : > { %s1218_s11 = scalar_lea.hbm %s1894_s2, 1024 }
  0x1e   : > { %p1219_p11 = scmp.ne.s32.totalorder %s1894_s2, %s1218_s11  ;;  %p1225_p3 = scmp.lt.u32.totalorder %s1218_s11, %s1894_s2 }
  0x20   : > { %p1221_p13 = pnand %p1548_p12, %p1219_p11 }
  0x22   : > { %p1222_p0 = pneg %p1221_p13 }
  0x24   : > { %p1227_p5 = pnand %p1225_p3, %p1222_p0 }
  0x26   : > { %1230 = shalt.err (!%p1227_p5)
}
  0x27   : > { %s1231_s17 = scalar_lea.vmem %s1526_s28, 1024  ;;  %p1239_p2 = scmp.lt.s32.totalorder %s1526_s28, %s1526_s28 }
  0x28   : > { %p1232_p7 = scmp.ne.s32.totalorder %s1526_s28, %s1231_s17  ;;  %p1240_p6 = scmp.lt.s32.totalorder %s1231_s17, %s1231_s17 }
  0x2a   : > { %p1234_p9 = pnand %p1232_p7, %p1548_p12  ;;  %p1241_p11 = por %p1240_p6, %p1239_p2 }
  0x2c   : > { %p1235_p1 = pneg %p1234_p9 }
  0x2e   : > { %p1242_p13 = pnand %p1241_p11, %p1235_p1 }
  0x30   : > { %1245 = shalt.err (!%p1242_p13)
}
  0x31   : > { %s1883_s23 = smov 128   ;;  %s1885_s27 = smov 8  }
  0x32   : > { %1153 = dma.hbm_to_vmem [thread:$0]  (!%p1532_p10), %s1894_s2, 1024, %s1526_s28, [#allocation6], %s1883_s23, %s1883_s23, %s1885_s27  }
  0x33   : > { %s1896_s3 = sld [smem:[#allocation19_spill]] }
  0x39   : > { %s1246_s11 = scalar_lea.hbm %s1896_s3, 2048 }
  0x3a   : > { %p1247_p1 = scmp.ne.s32.totalorder %s1896_s3, %s1246_s11  ;;  %p1253_p0 = scmp.lt.u32.totalorder %s1246_s11, %s1896_s3 }
  0x3c   : > { %p1249_p2 = pnand %p1247_p1, %p1548_p12 }
  0x3e   : > { %p1250_p6 = pneg %p1249_p2 }
  0x40   : > { %p1255_p3 = pnand %p1253_p0, %p1250_p6 }
  0x42   : > { %1258 = shalt.err (!%p1255_p3)
}
  0x43   : > { %s1259_s28 = scalar_lea.vmem %s1536_s6, 2048  ;;  %p1267_p11 = scmp.lt.s32.totalorder %s1536_s6, %s1536_s6 }
  0x44   : > { %p1260_p5 = scmp.ne.s32.totalorder %s1536_s6, %s1259_s28  ;;  %p1268_p13 = scmp.lt.s32.totalorder %s1259_s28, %s1259_s28 }
  0x46   : > { %p1262_p7 = pnand %p1260_p5, %p1548_p12  ;;  %p1269_p1 = por %p1268_p13, %p1267_p11 }
  0x48   : > { %p1263_p9 = pneg %p1262_p7 }
  0x4a   : > { %p1270_p2 = pnand %p1269_p1, %p1263_p9 }
  0x4c   : > { %1273 = shalt.err (!%p1270_p2)
}
  0x4d   : > { %1156 = dma.hbm_to_vmem [thread:$0]  (!%p1532_p10), %s1896_s3, 2048, %s1536_s6, [#allocation9], %s1883_s23, %s1883_s23, %s1885_s27  }
  0x4e   : > { %s1274_s10 = scalar_lea.hbm %s1878_s4, 1024 }
  0x4f   : > { %p1275_p6 = scmp.ne.s32.totalorder %s1878_s4, %s1274_s10  ;;  %p1281_p5 = scmp.lt.u32.totalorder %s1274_s10, %s1878_s4 }
  0x51   : > { %p1277_p0 = pnand %p1275_p6, %p1548_p12 }
  0x53   : > { %p1278_p3 = pneg %p1277_p0 }
  0x55   : > { %p1283_p7 = pnand %p1281_p5, %p1278_p3 }
  0x57   : > { %1286 = shalt.err (!%p1283_p7)
}
  0x58   : > { %s1287_s16 = scalar_lea.vmem %s210_s8, 1024  ;;  %p1295_p1 = scmp.lt.s32.totalorder %s210_s8, %s210_s8 }
  0x59   : > { %p1288_p9 = scmp.ne.s32.totalorder %s210_s8, %s1287_s16  ;;  %p1296_p2 = scmp.lt.s32.totalorder %s1287_s16, %s1287_s16 }
  0x5b   : > { %p1290_p11 = pnand %p1288_p9, %p1548_p12  ;;  %p1297_p4 = por %p1296_p2, %p1295_p1 }
  0x5d   : > { %p1291_p13 = pneg %p1290_p11 }
  0x5f   : > { %p1298_p8 = pnand %p1297_p4, %p1291_p13 }
  0x61   : > { %1301 = shalt.err (!%p1298_p8)
}
  0x62   : > { %1159 = dma.hbm_to_vmem [thread:$0]  (!%p1532_p10), %s1878_s4, 1024, %s210_s8, [#allocation9], %s1883_s23, %s1883_s23, %s1885_s27  }
  0x63   : > { %s1621_s29 = sadd.s32 1, %s1440_s21   ;;  %s32_s17 = sadd.s32 1, %s1436_s20 }
  0x64   : > { %s29_s14 = ssub.s32 %s1440_s21, %s1621_s29  ;;  %p39_p8 = scmp.ne.s32.totalorder %s1436_s20, %s1432_s19 }
  0x65   : > { %p30_p4 = scmp.eq.s32.totalorder %s29_s14, 0  ;;  %p40_p12 = scmp.eq.s32.totalorder %s1440_s21, 0 }
  0x66   : > { %p1174_p6 = scmp.lt.s32.totalorder %s1440_s21, 8  ;;  %p1897_p3 = scmp.eq.s32.totalorder %s1503_s22, 7 }
  0x67   : > { %s1631_s30 = scalar_select %p30_p4, %s1436_s20, %s32_s17  }
  0x68   : > { %p41_p0 = por %p40_p12, %p39_p8  ;;  %p1635_p5 = por %p1897_p3, %p39_p8 }
  0x69   : > { %s1640_s9 = sand.u32 1, %s1436_s20   ;;  %s1129_s8 = smul.u32 3072, %s1440_s21 }
  0x6a   : > { %s1128_s10 = smul.u32 192, %s1640_s9  ;;  %s1899_s0 = sld [smem:[#allocation17_spill]] }
  0x6b   : > { %p1649_p10 = pnand %p1174_p6, %p41_p0  ;;  %s224_s14 = scalar_lea.sflag [#allocation3], %s1640_s9 }
  0x6c   : > { %s227_s6 = scalar_lea.vmem [#allocation2], %s1128_s10 }
  0x6d   : > { %s234_s28 = sshll.u32 %s227_s6, 4  ;;  %p1304_p9 = pneg %p1649_p10  ;;  %s1654_s28 = int_to_ptr.vmem [resolvable:$true] %s234_s28 }
  0x70   : > { %s1647_s13 = scalar_lea.hbm %s1899_s0, %s1129_s8  ;;  %s1307_s12 = scalar_lea.hbm %s1899_s0, 24576 }
  0x71   : > { %s1302_s17 = scalar_lea.hbm %s1647_s13, 3072  ;;  %p1308_p1 = scmp.lt.u32.totalorder %s1647_s13, %s1899_s0 }
  0x72   : > { %p1303_p7 = scmp.ne.s32.totalorder %s1647_s13, %s1302_s17  ;;  %p1309_p2 = scmp.lt.u32.totalorder %s1307_s12, %s1302_s17 }
  0x73   : > { %p1311_p8 = scmp.lt.u32.totalorder %s1302_s17, %s1647_s13 }
  0x74   : > { %p1305_p11 = pnand %p1304_p9, %p1303_p7  ;;  %p1310_p4 = por %p1309_p2, %p1308_p1 }
  0x76   : > { %p1306_p13 = pneg %p1305_p11  ;;  %p1312_p12 = por %p1311_p8, %p1310_p4 }
  0x78   : > { %p1313_p6 = pnand %p1312_p12, %p1306_p13 }
  0x7a   : > { %1316 = shalt.err (!%p1313_p6)
}
  0x7b   : > { %s1317_s10 = scalar_lea.vmem %s1654_s28, 3072  ;;  %s1447_s6 = smov [#allocation2]  }
  0x7c   : > { %p1318_p0 = scmp.ne.s32.totalorder %s1654_s28, %s1317_s10  ;;  %s1322_s8 = sshll.u32 %s1447_s6, 4  ;;  %s1323_s8 = int_to_ptr.vmem [resolvable:$false] %s1322_s8 }
  0x7d   : > { %s1324_s23 = scalar_lea.vmem %s1323_s8, 6144  ;;  %p1325_p11 = scmp.lt.s32.totalorder %s1654_s28, %s1323_s8 }
  0x7e   : > { %p1320_p3 = pnand %p1318_p0, %p1304_p9  ;;  %p1326_p1 = scmp.lt.s32.totalorder %s1324_s23, %s1317_s10 }
  0x80   : > { %p1321_p7 = pneg %p1320_p3  ;;  %p1327_p2 = por %p1326_p1, %p1325_p11 }
  0x82   : > { %p1328_p4 = pnand %p1327_p2, %p1321_p7 }
  0x84   : > { %1331 = shalt.err (!%p1328_p4)
}
  0x85   : > { %s1901_s27 = smov 8   ;;  %s1902_s17 = smov 128  }
  0x86   : > { %1163 = dma.hbm_to_vmem [thread:$0]  (!%p1649_p10), %s1647_s13, 3072, %s1654_s28, %s224_s14, %s1902_s17, %s1902_s17, %s1901_s27  }
  0x87   : > { %s932_s11 = sshll.u32 %s1640_s9, 6  ;;  %s967_s12 = sshll.u32 %s1440_s21, 10 }
  0x88   : > { %s1692_s8 = scalar_lea.hbm %s1875_s1, %s967_s12  ;;  %s248_s23 = scalar_lea.vmem [#allocation5], %s932_s11 }
  0x89   : > { %s255_s16 = sshll.u32 %s248_s23, 4  ;;  %s1903_s0 = sand.u32 1, %s1440_s21   ;;  %s1694_s16 = int_to_ptr.vmem [resolvable:$true] %s255_s16 }
  0x8a   : > { %s1698_s2 = scalar_lea.sflag [#allocation6], %s1903_s0  ;;  %s1332_s3 = scalar_lea.hbm %s1692_s8, 1024 }
  0x8b   : > { %p1333_p13 = scmp.ne.s32.totalorder %s1692_s8, %s1332_s3  ;;  %s1337_s28 = scalar_lea.hbm %s1875_s1, 8192 }
  0x8c   : > { %p1338_p6 = scmp.lt.u32.totalorder %s1692_s8, %s1875_s1  ;;  %p1339_p0 = scmp.lt.u32.totalorder %s1337_s28, %s1332_s3 }
  0x8d   : > { %p1335_p8 = pnand %p1333_p13, %p1304_p9  ;;  %p1341_p7 = scmp.lt.u32.totalorder %s1332_s3, %s1692_s8 }
  0x8e   : > { %p1340_p3 = por %p1339_p0, %p1338_p6 }
  0x8f   : > { %p1336_p12 = pneg %p1335_p8 }
  0x90   : > { %p1342_p11 = por %p1341_p7, %p1340_p3 }
  0x92   : > { %p1343_p1 = pnand %p1342_p11, %p1336_p12 }
  0x94   : > { %1346 = shalt.err (!%p1343_p1)
}
  0x95   : > { %s1347_s0 = scalar_lea.vmem %s1694_s16, 1024  ;;  %s1448_s11 = smov [#allocation5]  }
  0x96   : > { %p1348_p2 = scmp.ne.s32.totalorder %s1694_s16, %s1347_s0  ;;  %s1352_s10 = sshll.u32 %s1448_s11, 4  ;;  %s1353_s10 = int_to_ptr.vmem [resolvable:$false] %s1352_s10 }
  0x97   : > { %s1354_s6 = scalar_lea.vmem %s1353_s10, 2048  ;;  %p1355_p8 = scmp.lt.s32.totalorder %s1694_s16, %s1353_s10 }
  0x98   : > { %p1350_p4 = pnand %p1348_p2, %p1304_p9  ;;  %p1356_p6 = scmp.lt.s32.totalorder %s1354_s6, %s1347_s0 }
  0x9a   : > { %p1351_p13 = pneg %p1350_p4  ;;  %p1357_p0 = por %p1356_p6, %p1355_p8 }
  0x9c   : > { %p1358_p3 = pnand %p1357_p0, %p1351_p13 }
  0x9e   : > { %1361 = shalt.err (!%p1358_p3)
}
  0x9f   : > { %1166 = dma.hbm_to_vmem [thread:$0]  (!%p1649_p10), %s1692_s8, 1024, %s1694_s16, %s1698_s2, %s1902_s17, %s1902_s17, %s1901_s27  }
  0xa0   : > { %p1904_p9 = scmp.ne.s32.totalorder %s1892_s26, 0 }
  0xa1   : > { %s1730_s3 = sand.u32 (!%p1904_p9), 1, %s1432_s19   ;;  %p1905_p12 = scmp.ne.s32.totalorder (!%p1904_p9), %s1890_s24, 0 }
  0xa2   : > { %267 = sbr.rel (%p1904_p9) target bundleno = 682 (0x2aa), region = 40  ;;  %s270_s9 = scalar_lea.sflag (!%p1904_p9), [#allocation3], %s1730_s3 }
  0xa3   : > { %s1130_s23 = smul.u32 (!%p1904_p9), 192, %s1730_s3 }
  0xa5   : > { %s1736_s15 = scalar_lea.vmem (!%p1904_p9), [#allocation2], %s1130_s23 }
  0xa9   : > { %1407 = dma.done.wait (%p1905_p12), %s270_s9, 3072  }
  0xaa   : > { %1409 = vsyncadd (%p1905_p12), %s270_s9, 4294964224  ;;  %s278_s2 = sand.u32 1, %s1503_s22   ;;  %s936_s26 = sshll.u32 %s1730_s3, 6 }
  0xab   : > { %s279_s16 = scalar_lea.sflag [#allocation6], %s278_s2  ;;  %s282_s27 = scalar_lea.vmem [#allocation5], %s936_s26 }
  0xac   : > { %1411 = dma.done.wait (%p1905_p12), %s279_s16, 1024  }
  0xad   : > { %1413 = vsyncadd (%p1905_p12), %s279_s16, 4294966272  ;;  %p1906_p10 = scmp.eq.s32.totalorder %s1503_s22, 0 }
  0xaf   : > { %1415 = dma.done.wait (%p1906_p10), [#allocation6], 1024   ;;  %p1907_p7 = pmov %p1906_p10 }
  0xb1   : > { %1417 = vsyncadd (%p1907_p7), [#allocation6], 4294966272  ;;  %p1908_p11 = pmov %p1907_p7 }
  0xb2   : > { %p1909_p1 = pmov %p1907_p7 }
  0xb3   : > { %1419 = dma.done.wait (%p1908_p11), [#allocation9], 3072  }
  0xb4   : > { %1421 = vsyncadd (%p1909_p1), [#allocation9], 4294964224  ;;  %v334_v0 = vld [vmem:[%s282_s27] sm:$0xff]  ;;  %v335_v1 = vld [vmem:[%s282_s27 + $0x8] sm:$0xff]  ;;  %vm342_vm0 = vcmask 523264   ;;  %s1775_s24 = scalar_lea.vmem [#allocation11], %s1130_s23 }
  0xb5   : > { %v336_v2 = vld [vmem:[%s282_s27 + $0x10] sm:$0xff]  ;;  %v1080_v3 = vpack.c.bf16 %v335_v1, %v334_v0  ;;  %v337_v4 = vld [vmem:[%s282_s27 + $0x18] sm:$0xff]  ;;  %v338_v6 = vld [vmem:[%s282_s27 + $0x20] sm:$0xff]  ;;  %s1131_s17 = smul.u32 3072, %s1503_s22  ;;  %s801_s8 = sshll.u32 %s1775_s24, 4  ;;  %s1829_s8 = int_to_ptr.vmem [resolvable:$true] %s801_s8 }
  0xb6   : > { %v1084_v5 = vpack.c.bf16 %v337_v4, %v336_v2  ;;  %v339_v7 = vld [vmem:[%s282_s27 + $0x28] sm:$0xff]  ;;  %v326_v8 = vld [vmem:[#allocation7] sm:$0xff]  ;;  %v340_v10 = vld [vmem:[%s282_s27 + $0x30] sm:$0xff]  ;;  %s788_s22 = scalar_lea.sflag [#allocation4], %s1730_s3  ;;  %s1362_s12 = scalar_lea.vmem %s1829_s8, 3072 }
  0xb7   : > { %1081 = vmatprep.subr.bf16.mxu0 %v1080_v3  ;;  %1024 = vmatprep.mubr.msk.f32.mxu0 %vm342_vm0, %v326_v8  ;;  %v1088_v9 = vpack.c.bf16 %v339_v7, %v338_v6  ;;  %v472_v11 = vld [vmem:[#allocation8] sm:$0xff]  ;;  %v473_v12 = vld [vmem:[#allocation8 + $0x8] sm:$0xff]  ;;  %v341_v13 = vld [vmem:[%s282_s27 + $0x38] sm:$0xff]  ;;  %s1827_s14 = scalar_lea.hbm %s1879_s5, %s1131_s17  ;;  %p1363_p2 = scmp.ne.s32.totalorder %s1829_s8, %s1362_s12 }
  0xb8   : > { %1083 = vmatpush3.bf16.msra.mxu0 %v1080_v3  ;;  %v1096_v14 = vpack.c.bf16 %v473_v12, %v472_v11  ;;  %v474_v15 = vld [vmem:[#allocation8 + $0x10] sm:$0xff]  ;;  %v475_v16 = vld [vmem:[#allocation8 + $0x18] sm:$0xff]  ;;  %v476_v18 = vld [vmem:[#allocation8 + $0x20] sm:$0xff]  ;;  %v1092_v20 = vpack.c.bf16 %v341_v13, %v340_v10  ;;  %s1449_s0 = smov [#allocation11]  }
  0xb9   : > { %1085 = vmatprep.subr.bf16.mxu0 %v1084_v5  ;;  %v1100_v17 = vpack.c.bf16 %v475_v16, %v474_v15  ;;  %v477_v19 = vld [vmem:[#allocation8 + $0x28] sm:$0xff]  ;;  %v478_v22 = vld [vmem:[#allocation8 + $0x30] sm:$0xff]  ;;  %v479_v23 = vld [vmem:[#allocation8 + $0x38] sm:$0xff]  ;;  %p1364_p4 = pnand %p1363_p2, %p1635_p5  ;;  %s1366_s11 = sshll.u32 %s1449_s0, 4  ;;  %s1367_s11 = int_to_ptr.vmem [resolvable:$false] %s1366_s11 }
  0xba   : > { %1097 = vmatprep.subr.bf16.mxu1 %v1096_v14  ;;  %v1104_v21 = vpack.c.bf16 %v477_v19, %v476_v18  ;;  %v1108_v24 = vpack.c.bf16 %v479_v23, %v478_v22  ;;  %v480_v25 = vld [vmem:[#allocation8 + $0x40] sm:$0xff]  ;;  %v481_v26 = vld [vmem:[#allocation8 + $0x48] sm:$0xff]  ;;  %v328_v28 = vld [vmem:[#allocation7 + $0x10] sm:$0xff]  ;;  %s1368_s10 = scalar_lea.vmem %s1367_s11, 6144  ;;  %p1369_p8 = scmp.lt.s32.totalorder %s1829_s8, %s1367_s11 }
  0xbb   : > { %1099 = vmatpush3.bf16.msra.mxu1 %v1096_v14  ;;  %v327_v27 = vld [vmem:[#allocation7 + $0x8] sm:$0xff]  ;;  %v1112_v29 = vpack.c.bf16 %v481_v26, %v480_v25  ;;  %v482_v30 = vld [vmem:[#allocation8 + $0x50] sm:$0xff]  ;;  %v483_v31 = vld [vmem:[#allocation8 + $0x58] sm:$0xff]  ;;  %p1365_p13 = pneg %p1364_p4  ;;  %p1370_p6 = scmp.lt.s32.totalorder %s1368_s10, %s1362_s12 }
  0xbc   : > { %1087 = vmatpush3.bf16.msra.mxu0 %v1084_v5  ;;  %1101 = vmatprep.subr.bf16.mxu1 %v1100_v17  ;;  %v329_v32 = vld [vmem:[#allocation7 + $0x18] sm:$0xff]  ;;  %v330_v33 = vld [vmem:[#allocation7 + $0x20] sm:$0xff]  ;;  %v1116_v34 = vpack.c.bf16 %v483_v31, %v482_v30  ;;  %v485_v36 = vld [vmem:[#allocation8 + $0x68] sm:$0xff] }
  0xbd   : > { %1089 = vmatprep.subr.bf16.mxu0 %v1088_v9  ;;  %v484_v35 = vld [vmem:[#allocation8 + $0x60] sm:$0xff]  ;;  %v331_v37 = vld [vmem:[#allocation7 + $0x28] sm:$0xff]  ;;  %v332_v38 = vld [vmem:[#allocation7 + $0x30] sm:$0xff]  ;;  %p1371_p0 = por %p1370_p6, %p1369_p8 }
  0xbe   : > { %v1120_v39 = vpack.c.bf16 %v485_v36, %v484_v35  ;;  %v486_v40 = vld [vmem:[#allocation8 + $0x70] sm:$0xff]  ;;  %v487_v41 = vld [vmem:[#allocation8 + $0x78] sm:$0xff]  ;;  %v618_v53 = vld [vmem:[%s1736_s15 + $0x8] sm:$0xff] }
  0xbf   : > { %1103 = vmatpush3.bf16.msra.mxu1 %v1100_v17  ;;  %v333_v42 = vld [vmem:[#allocation7 + $0x38] sm:$0xff]  ;;  %v1124_v43 = vpack.c.bf16 %v487_v41, %v486_v40  ;;  %v949_v54 = vld [vmem:[%s1736_s15 + $0x48] sm:$0xff]  ;;  %v617_v58 = vld [vmem:[%s1736_s15] sm:$0xff]  ;;  %p1372_p3 = pnand %p1371_p0, %p1365_p13 }
  0xc0   : > { %1091 = vmatpush3.bf16.msra.mxu0 %v1088_v9  ;;  %1105 = vmatprep.subr.bf16.mxu1 %v1104_v21  ;;  %v957_v55 = vld [vmem:[%s1736_s15 + $0x88] sm:$0xff]  ;;  %v948_v59 = vld [vmem:[%s1736_s15 + $0x40] sm:$0xff]  ;;  %v620_v8 = vld [vmem:[%s1736_s15 + $0x18] sm:$0xff] }
  0xc1   : > { %1093 = vmatprep.subr.bf16.mxu0 %v1092_v20  ;;  %v956_v60 = vld [vmem:[%s1736_s15 + $0x80] sm:$0xff]  ;;  %v610_v2 = vld [vmem:[#allocation10 + $0x8] sm:$0xff]  ;;  %v951_v14 = vld [vmem:[%s1736_s15 + $0x58] sm:$0xff] }
  0xc2   : > { %v609_v12 = vld [vmem:[#allocation10] sm:$0xff] }
  0xc3   : > { %1107 = vmatpush3.bf16.msra.mxu1 %v1104_v21 }
  0xc4   : > { %1095 = vmatpush3.bf16.msra.mxu0 %v1092_v20  ;;  %1109 = vmatprep.subr.bf16.mxu1 %v1108_v24  ;;  %v959_v20 = vld [vmem:[%s1736_s15 + $0x98] sm:$0xff] }
  0xc7   : > { %1025 = vmatmul.mubr.msk.f32.vlgmr.msra.gmra.mrb[0].mxu0 %vm342_vm0, %v327_v27  ;;  %1111 = vmatpush3.bf16.msra.mxu1 %v1108_v24 }
  0xc8   : > { %1027 = vmatprep.mubr.msk.f32.mxu0 %vm342_vm0, %v328_v28  ;;  %1113 = vmatprep.subr.bf16.mxu1 %v1112_v29 }
  0xcb   : > { %1028 = vmatmul.mubr.msk.f32.gmra.mrb[2].mxu0 %vm342_vm0, %v329_v32  ;;  %1115 = vmatpush3.bf16.msra.mxu1 %v1112_v29  ;;  %v612_v32 = vld [vmem:[#allocation10 + $0x18] sm:$0xff] }
  0xcc   : > { %1030 = vmatprep.mubr.msk.f32.mxu0 %vm342_vm0, %v330_v33  ;;  %1117 = vmatprep.subr.bf16.mxu1 %v1116_v34 }
  0xcf   : > { %1031 = vmatmul.mubr.msk.f32.gmra.mrb[4].mxu0 %vm342_vm0, %v331_v37  ;;  %1119 = vmatpush3.bf16.msra.mxu1 %v1116_v34 }
  0xd0   : > { %1033 = vmatprep.mubr.msk.f32.mxu0 %vm342_vm0, %v332_v38  ;;  %1121 = vmatprep.subr.bf16.mxu1 %v1120_v39 }
  0xd3   : > { %1034 = vmatmul.mubr.msk.f32.gmra.mrb[6].mxu0 %vm342_vm0, %v333_v42  ;;  %1123 = vmatpush3.bf16.msra.mxu1 %v1120_v39 }
  0xd4   : > { %1125 = vmatprep.subr.bf16.mxu1 %v1124_v43 }
  0xd7   : > { %1127 = vmatpush3.bf16.msra.mxu1 %v1124_v43 }
 0x19a   : > { %v1026_v44 = vpop.f32.mrb[0].mxu0 }
 0x19b   : > { %v433_v45 = vpop.f32.mrb[1].mxu0 }
 0x19c   : > { %1068 = vmatprep.mubr.f32.mxu1 %v433_v45  ;;  %v950_v45 = vld [vmem:[%s1736_s15 + $0x50] sm:$0xff] }
 0x19d   : > { %1069 = vmatmul.mubr.f32.vlgmr.msra.gmra.mrb[0].mxu1 %v1026_v44  ;;  %v619_v44 = vld [vmem:[%s1736_s15 + $0x10] sm:$0xff] }
 0x19e   : > { %v1029_v46 = vpop.f32.mrb[2].mxu0 }
 0x19f   : > { %v443_v47 = vpop.f32.mrb[3].mxu0 }
 0x1a0   : > { %1071 = vmatprep.mubr.f32.mxu1 %v443_v47 }
 0x1a1   : > { %1072 = vmatmul.mubr.f32.gmra.mrb[2].mxu1 %v1029_v46 }
 0x1a2   : > { %v1032_v48 = vpop.f32.mrb[4].mxu0 }
 0x1a3   : > { %v453_v49 = vpop.f32.mrb[5].mxu0 }
 0x1a4   : > { %1074 = vmatprep.mubr.f32.mxu1 %v453_v49 }
 0x1a5   : > { %1075 = vmatmul.mubr.f32.gmra.mrb[4].mxu1 %v1032_v48 }
 0x1a6   : > { %v1035_v50 = vpop.f32.mrb[6].mxu0 }
 0x1a7   : > { %v463_v51 = vpop.f32.mrb[7].mxu0 }
 0x1a8   : > { %1077 = vmatprep.mubr.f32.mxu1 %v463_v51 }
 0x1a9   : > { %1078 = vmatmul.mubr.f32.gmra.mrb[6].mxu1 %v1035_v50  ;;  %v958_v50 = vld [vmem:[%s1736_s15 + $0x90] sm:$0xff] }
 0x270   : > { %v1070_v52 = vpop.f32.mrb[0].mxu1 }
 0x271   : > { %v594_v56 = vsub.f32 1.0, %v1070_v52  ;;  %v554_v57 = vpop.f32.mrb[1].mxu1  ;;  %v602_v62 = vmul.f32 0.9, %v1070_v52 }
 0x272   : > { %v593_v61 = vsub.f32 1.0, %v554_v57  ;;  %v601_v3 = vmul.f32 0.9, %v554_v57 }
 0x273   : > { %v626_v63 = vmul.f32 %v618_v53, %v594_v56  ;;  %v675_v0 = vmul.f32 %v949_v54, %v594_v56  ;;  %v700_v1 = vmul.f32 %v957_v55, %v594_v56 }
 0x274   : > { %v625_v4 = vmul.f32 %v617_v58, %v593_v61  ;;  %v674_v5 = vmul.f32 %v948_v59, %v593_v61  ;;  %v699_v6 = vmul.f32 %v956_v60, %v593_v61  ;;  %v1073_v7 = vpop.f32.mrb[2].mxu1  ;;  %v622_v61 = vld [vmem:[%s1736_s15 + $0x28] sm:$0xff] }
 0x275   : > { %v634_v9 = vadd.f32 %v626_v63, %v602_v62  ;;  %v683_v10 = vadd.f32 %v675_v0, %v602_v62  ;;  %v708_v11 = vadd.f32 %v700_v1, %v602_v62  ;;  %v596_v13 = vsub.f32 1.0, %v1073_v7  ;;  %v564_v15 = vpop.f32.mrb[3].mxu1  ;;  %v611_v0 = vld [vmem:[#allocation10 + $0x10] sm:$0xff] }
 0x276   : > { %v633_v16 = vadd.f32 %v625_v4, %v601_v3  ;;  %v682_v17 = vadd.f32 %v674_v5, %v601_v3  ;;  %v707_v18 = vadd.f32 %v699_v6, %v601_v3  ;;  %v604_v19 = vmul.f32 0.9, %v1073_v7  ;;  %v953_v3 = vld [vmem:[%s1736_s15 + $0x68] sm:$0xff] }
 0x277   : > { %v642_v21 = vmul.f32 1.1, %v634_v9  ;;  %v716_v22 = vmul.f32 0.95, %v708_v11  ;;  %v748_v23 = vmul.f32 %v683_v10, %v610_v2  ;;  %v628_v24 = vmul.f32 %v620_v8, %v596_v13  ;;  %v961_v4 = vld [vmem:[%s1736_s15 + $0xa8] sm:$0xff] }
 0x278   : > { %v641_v25 = vmul.f32 1.1, %v633_v16  ;;  %v715_v26 = vmul.f32 0.95, %v707_v18  ;;  %v747_v27 = vmul.f32 %v682_v17, %v609_v12  ;;  %v677_v28 = vmul.f32 %v951_v14, %v596_v13  ;;  %v1076_v29 = vpop.f32.mrb[4].mxu1  ;;  %v952_v18 = vld [vmem:[%s1736_s15 + $0x60] sm:$0xff] }
 0x279   : > { %v650_v30 = vmax.f32 %v642_v21, 0.0  ;;  %v724_v31 = vmax.f32 %v716_v22, 0.0  ;;  %772 = vst [vmem:[%s1775_s24 + $0x48] sm:$0xff] %v748_v23  ;;  %v636_v33 = vadd.f32 %v628_v24, %v604_v19  ;;  %v702_v34 = vmul.f32 %v959_v20, %v596_v13  ;;  %v574_v35 = vpop.f32.mrb[5].mxu1  ;;  %v621_v13 = vld [vmem:[%s1736_s15 + $0x20] sm:$0xff]  ;;  %v614_v22 = vld [vmem:[#allocation10 + $0x28] sm:$0xff] }
 0x27a   : > { %v649_v36 = vmax.f32 %v641_v25, 0.0  ;;  %v723_v37 = vmax.f32 %v715_v26, 0.0  ;;  %771 = vst [vmem:[%s1775_s24 + $0x40] sm:$0xff] %v747_v27  ;;  %v685_v38 = vadd.f32 %v677_v28, %v604_v19  ;;  %v595_v39 = vsub.f32 1.0, %v564_v15 }
 0x27b   : > { %v658_v40 = vmin.f32 %v650_v30, 1.0  ;;  %v732_v41 = vmin.f32 %v724_v31, 1.0  ;;  %v644_v42 = vmul.f32 1.1, %v636_v33  ;;  %v710_v43 = vadd.f32 %v702_v34, %v604_v19  ;;  %v960_v19 = vld [vmem:[%s1736_s15 + $0xa0] sm:$0xff] }
 0x27c   : > { %v657_v46 = vmin.f32 %v649_v36, 1.0  ;;  %v731_v47 = vmin.f32 %v723_v37, 1.0  ;;  %v750_v48 = vmul.f32 %v685_v38, %v612_v32  ;;  %v603_v49 = vmul.f32 0.9, %v564_v15  ;;  %v1782_v51 = vpop.f32.mrb[6].mxu1  ;;  %v613_v37 = vld [vmem:[#allocation10 + $0x20] sm:$0xff] }
 0x27d   : > { %v740_v52 = vmul.f32 %v658_v40, %v610_v2  ;;  %v756_v53 = vmul.f32 %v732_v41, %v610_v2  ;;  %v652_v54 = vmax.f32 %v644_v42, 0.0  ;;  %v718_v55 = vmul.f32 0.95, %v710_v43  ;;  %v1784_v56 = vpop.f32.mrb[7].mxu1  ;;  %v624_v42 = vld [vmem:[%s1736_s15 + $0x38] sm:$0xff] }
 0x27e   : > { %v739_v57 = vmul.f32 %v657_v46, %v609_v12  ;;  %v755_v58 = vmul.f32 %v731_v47, %v609_v12  ;;  %774 = vst [vmem:[%s1775_s24 + $0x58] sm:$0xff] %v750_v48  ;;  %v627_v59 = vmul.f32 %v619_v44, %v595_v39  ;;  %v676_v60 = vmul.f32 %v950_v45, %v595_v39  ;;  %v955_v47 = vld [vmem:[%s1736_s15 + $0x78] sm:$0xff] }
 0x27f   : > { %764 = vst [vmem:[%s1775_s24 + $0x8] sm:$0xff] %v740_v52  ;;  %780 = vst [vmem:[%s1775_s24 + $0x88] sm:$0xff] %v756_v53  ;;  %v660_v62 = vmin.f32 %v652_v54, 1.0  ;;  %v726_v63 = vmax.f32 %v718_v55, 0.0  ;;  %v701_v1 = vmul.f32 %v958_v50, %v595_v39  ;;  %v598_v2 = vsub.f32 1.0, %v1076_v29  ;;  %v963_v48 = vld [vmem:[%s1736_s15 + $0xb8] sm:$0xff] }
 0x280   : > { %763 = vst [vmem:[%s1775_s24] sm:$0xff] %v739_v57  ;;  %779 = vst [vmem:[%s1775_s24 + $0x80] sm:$0xff] %v755_v58  ;;  %v635_v5 = vadd.f32 %v627_v59, %v603_v49  ;;  %v684_v6 = vadd.f32 %v676_v60, %v603_v49  ;;  %v606_v7 = vmul.f32 0.9, %v1076_v29  ;;  %v597_v8 = vsub.f32 1.0, %v574_v35 }
 0x281   : > { %v734_v9 = vmin.f32 %v726_v63, 1.0  ;;  %v742_v10 = vmul.f32 %v660_v62, %v612_v32  ;;  %v709_v11 = vadd.f32 %v701_v1, %v603_v49  ;;  %v630_v12 = vmul.f32 %v622_v61, %v598_v2  ;;  %v623_v63 = vld [vmem:[%s1736_s15 + $0x30] sm:$0xff] }
 0x282   : > { %v643_v14 = vmul.f32 1.1, %v635_v5  ;;  %v749_v15 = vmul.f32 %v684_v6, %v611_v0  ;;  %v679_v16 = vmul.f32 %v953_v3, %v598_v2  ;;  %v704_v17 = vmul.f32 %v961_v4, %v598_v2  ;;  %v616_v3 = vld [vmem:[#allocation10 + $0x38] sm:$0xff]  ;;  %v962_v6 = vld [vmem:[%s1736_s15 + $0xb0] sm:$0xff] }
 0x283   : > { %v758_v20 = vmul.f32 %v734_v9, %v612_v32  ;;  %766 = vst [vmem:[%s1775_s24 + $0x18] sm:$0xff] %v742_v10  ;;  %v717_v21 = vmul.f32 0.95, %v709_v11  ;;  %v638_v23 = vadd.f32 %v630_v12, %v606_v7  ;;  %v605_v24 = vmul.f32 0.9, %v574_v35 }
 0x284   : > { %v651_v25 = vmax.f32 %v643_v14, 0.0  ;;  %773 = vst [vmem:[%s1775_s24 + $0x50] sm:$0xff] %v749_v15  ;;  %v687_v26 = vadd.f32 %v679_v16, %v606_v7  ;;  %v712_v27 = vadd.f32 %v704_v17, %v606_v7  ;;  %v629_v28 = vmul.f32 %v621_v13, %v597_v8  ;;  %v615_v17 = vld [vmem:[#allocation10 + $0x30] sm:$0xff] }
 0x285   : > { %782 = vst [vmem:[%s1775_s24 + $0x98] sm:$0xff] %v758_v20  ;;  %v725_v29 = vmax.f32 %v717_v21, 0.0  ;;  %v646_v30 = vmul.f32 1.1, %v638_v23  ;;  %v678_v31 = vmul.f32 %v952_v18, %v597_v8  ;;  %v703_v33 = vmul.f32 %v960_v19, %v597_v8 }
 0x286   : > { %v659_v34 = vmin.f32 %v651_v25, 1.0  ;;  %v720_v32 = vmul.f32 0.95, %v712_v27  ;;  %v752_v36 = vmul.f32 %v687_v26, %v614_v22  ;;  %v637_v38 = vadd.f32 %v629_v28, %v605_v24 }
 0x287   : > { %v733_v35 = vmin.f32 %v725_v29, 1.0  ;;  %v654_v39 = vmax.f32 %v646_v30, 0.0  ;;  %v686_v40 = vadd.f32 %v678_v31, %v605_v24  ;;  %v711_v41 = vadd.f32 %v703_v33, %v605_v24 }
 0x288   : > { %v741_v43 = vmul.f32 %v659_v34, %v611_v0  ;;  %v728_v44 = vmax.f32 %v720_v32, 0.0  ;;  %776 = vst [vmem:[%s1775_s24 + $0x68] sm:$0xff] %v752_v36  ;;  %v645_v45 = vmul.f32 1.1, %v637_v38  ;;  %v600_v46 = vsub.f32 1.0, %v1782_v51 }
 0x289   : > { %v757_v49 = vmul.f32 %v733_v35, %v611_v0  ;;  %v662_v50 = vmin.f32 %v654_v39, 1.0  ;;  %v719_v52 = vmul.f32 0.95, %v711_v41  ;;  %v751_v53 = vmul.f32 %v686_v40, %v613_v37  ;;  %v954_v0 = vld [vmem:[%s1736_s15 + $0x70] sm:$0xff] }
 0x28a   : > { %765 = vst [vmem:[%s1775_s24 + $0x10] sm:$0xff] %v741_v43  ;;  %v736_v54 = vmin.f32 %v728_v44, 1.0  ;;  %v653_v55 = vmax.f32 %v645_v45, 0.0  ;;  %v608_v57 = vmul.f32 0.9, %v1782_v51  ;;  %v632_v58 = vmul.f32 %v624_v42, %v600_v46 }
 0x28b   : > { %781 = vst [vmem:[%s1775_s24 + $0x90] sm:$0xff] %v757_v49  ;;  %v744_v59 = vmul.f32 %v662_v50, %v614_v22  ;;  %v727_v60 = vmax.f32 %v719_v52, 0.0  ;;  %775 = vst [vmem:[%s1775_s24 + $0x60] sm:$0xff] %v751_v53  ;;  %v681_v61 = vmul.f32 %v955_v47, %v600_v46  ;;  %v706_v62 = vmul.f32 %v963_v48, %v600_v46 }
 0x28c   : > { %v760_v1 = vmul.f32 %v736_v54, %v614_v22  ;;  %v661_v2 = vmin.f32 %v653_v55, 1.0  ;;  %v640_v4 = vadd.f32 %v632_v58, %v608_v57  ;;  %v599_v5 = vsub.f32 1.0, %v1784_v56 }
 0x28d   : > { %768 = vst [vmem:[%s1775_s24 + $0x28] sm:$0xff] %v744_v59  ;;  %v735_v51 = vmin.f32 %v727_v60, 1.0  ;;  %v689_v7 = vadd.f32 %v681_v61, %v608_v57  ;;  %v714_v8 = vadd.f32 %v706_v62, %v608_v57  ;;  %v607_v9 = vmul.f32 0.9, %v1784_v56 }
 0x28e   : > { %784 = vst [vmem:[%s1775_s24 + $0xa8] sm:$0xff] %v760_v1  ;;  %v743_v10 = vmul.f32 %v661_v2, %v613_v37  ;;  %v648_v11 = vmul.f32 1.1, %v640_v4  ;;  %v631_v12 = vmul.f32 %v623_v63, %v599_v5  ;;  %v680_v13 = vmul.f32 %v954_v0, %v599_v5 }
 0x28f   : > { %v759_v14 = vmul.f32 %v735_v51, %v613_v37  ;;  %v722_v15 = vmul.f32 0.95, %v714_v8  ;;  %v754_v16 = vmul.f32 %v689_v7, %v616_v3  ;;  %v705_v18 = vmul.f32 %v962_v6, %v599_v5 }
 0x290   : > { %767 = vst [vmem:[%s1775_s24 + $0x20] sm:$0xff] %v743_v10  ;;  %v656_v19 = vmax.f32 %v648_v11, 0.0  ;;  %v639_v20 = vadd.f32 %v631_v12, %v607_v9  ;;  %v688_v21 = vadd.f32 %v680_v13, %v607_v9 }
 0x291   : > { %783 = vst [vmem:[%s1775_s24 + $0xa0] sm:$0xff] %v759_v14  ;;  %v730_v56 = vmax.f32 %v722_v15, 0.0  ;;  %778 = vst [vmem:[%s1775_s24 + $0x78] sm:$0xff] %v754_v16  ;;  %v713_v22 = vadd.f32 %v705_v18, %v607_v9 }
 0x292   : > { %v664_v23 = vmin.f32 %v656_v19, 1.0  ;;  %v647_v24 = vmul.f32 1.1, %v639_v20  ;;  %v753_v25 = vmul.f32 %v688_v21, %v615_v17 }
 0x293   : > { %v738_v26 = vmin.f32 %v730_v56, 1.0  ;;  %v721_v27 = vmul.f32 0.95, %v713_v22 }
 0x294   : > { %v746_v28 = vmul.f32 %v664_v23, %v616_v3  ;;  %v655_v29 = vmax.f32 %v647_v24, 0.0  ;;  %777 = vst [vmem:[%s1775_s24 + $0x70] sm:$0xff] %v753_v25 }
 0x295   : > { %v762_v30 = vmul.f32 %v738_v26, %v616_v3  ;;  %v729_v31 = vmax.f32 %v721_v27, 0.0 }
 0x296   : > { %770 = vst [vmem:[%s1775_s24 + $0x38] sm:$0xff] %v746_v28  ;;  %v663_v33 = vmin.f32 %v655_v29, 1.0 }
 0x297   : > { %786 = vst [vmem:[%s1775_s24 + $0xb8] sm:$0xff] %v762_v30  ;;  %v737_v34 = vmin.f32 %v729_v31, 1.0 }
 0x298   : > { %v745_v32 = vmul.f32 %v663_v33, %v615_v17 }
 0x299   : > { %v761_v36 = vmul.f32 %v737_v34, %v615_v17 }
 0x29a   : > { %769 = vst [vmem:[%s1775_s24 + $0x30] sm:$0xff] %v745_v32 }
 0x29b   : > { %785 = vst [vmem:[%s1775_s24 + $0xb0] sm:$0xff] %v761_v36 }
 0x29c   : > { %1375 = shalt.err (!%p1372_p3)
}
 0x29d   : > { %s1376_s6 = scalar_lea.hbm %s1827_s14, 3072  ;;  %s1380_s15 = scalar_lea.hbm %s1879_s5, 24576 }
 0x29e   : > { %p1377_p9 = scmp.ne.s32.totalorder %s1827_s14, %s1376_s6  ;;  %p1381_p7 = scmp.lt.u32.totalorder %s1827_s14, %s1879_s5 }
 0x29f   : > { %p1382_p11 = scmp.lt.u32.totalorder %s1380_s15, %s1376_s6  ;;  %p1384_p2 = scmp.lt.u32.totalorder %s1376_s6, %s1827_s14 }
 0x2a0   : > { %p1378_p12 = pnand %p1377_p9, %p1635_p5 }
 0x2a1   : > { %p1383_p1 = por %p1382_p11, %p1381_p7 }
 0x2a2   : > { %p1379_p10 = pneg %p1378_p12 }
 0x2a3   : > { %p1385_p4 = por %p1384_p2, %p1383_p1 }
 0x2a5   : > { %p1386_p13 = pnand %p1385_p4, %p1379_p10 }
 0x2a7   : > { %1389 = shalt.err (!%p1386_p13)
}
 0x2a8   : > { %s1450_s16 = smov 128   ;;  %s1451_s27 = smov 8  }
 0x2a9   : > { %1148 = dma.vmem_to_hbm [thread:$0]  (%p1635_p5), %s1829_s8, 3072, %s1827_s14, %s788_s22, %s1450_s16, %s1450_s16, %s1451_s27  }
 0x2aa PF: > { %p1178_p8 = scmp.ge.s32.totalorder %s1440_s21, 2  ;;  %s816_s24 = sand.u32 1, %s1428_s18  }
 0x2ab   : > { %p1910_p6 = scmp.ne.s32.totalorder %s1891_s25, 0  ;;  %s817_s17 = scalar_lea.sflag [#allocation4], %s816_s24 }
 0x2ad   : > { %p1168_p0 = pnand %p1178_p8, %p1910_p6 }
 0x2af   : > { %1423 = dma.done.wait (!%p1168_p0), %s817_s17, 3072  }
 0x2b0   : > { %1425 = vsyncadd (!%p1168_p0), %s817_s17, 4294964224  ;;  %p22_p3 = scmp.ge.s32.totalorder %s1621_s29, 10   ;;  %s1911_s18 = smov %s1432_s19 }
 0x2b1   : > { %s1912_s19 = smov %s1436_s20  ;;  %s1913_s20 = smov %s1631_s30 }
 0x2b2   : > { %s1914_s21 = smov %s1621_s29  ;;  %24 = sbr.rel (!%p22_p3) target bundleno = 12 (0xc), region = 112 }
 0x2b9   :  { %822 = vsyncpa [#allocation3], 1 }
 0x2ba   :  { %824 = vsyncpa [#allocation3 + $0x1], 1 }
 0x2bb   :  { %825 = vsyncpa [#allocation6], 1 }
 0x2bc   :  { %827 = vsyncpa [#allocation6 + $0x1], 1 }
 0x2bd   :  { %828 = vsyncpa [#allocation9], 1 }
 0x2be   :  { %829 = vsyncpa [#allocation4], 1 }
 0x2bf   :  { %831 = vsyncpa [#allocation4 + $0x1], 1 }

</bundles_post_ra>
